<compile_context>
chip_gen: v6e
topology: v6e:2x2x1
jax: 0.10.0
libtpu: 0.0.40
codegen_flags: <defaults>
</compile_context>

<pallas_src>
import functools

import jax
import jax.numpy as jnp
from jax import lax
from jax.experimental import pallas as pl
from jax.experimental.pallas import tpu as pltpu


def _attn_compute(x_ref, w_ref, b_ref, o_ref, *, num_heads, dropout_p, seed_ref):
    B, S, D = x_ref.shape

    # Flatten the batch for the projections: 3 MXU pushes total instead of 3*B.
    x2 = x_ref[...].reshape(B * S, D)

    q = jnp.dot(x2, w_ref[0], preferred_element_type=jnp.float32) + b_ref[0]   # (B*S, D)
    k = jnp.dot(x2, w_ref[1], preferred_element_type=jnp.float32) + b_ref[1]
    v = jnp.dot(x2, w_ref[2], preferred_element_type=jnp.float32) + b_ref[2]

    q = q.reshape(B, S, D)
    k = k.reshape(B, S, D)
    v = v.reshape(B, S, D)

    # Batched logits contracting the feature dim (no explicit K transpose):
    #   s[b, i, j] = sum_d q[b, i, d] * k[b, j, d]
    s = lax.dot_general(q, k, (((2,), (2,)), ((0,), (0,))),
                        preferred_element_type=jnp.float32)                    # (B, S, S)

    # scaled_qk = (q @ k^T) / (1/sqrt(num_heads)) == (q @ k^T) * sqrt(num_heads).
    # Applied to the (B,S,S) logits (fewer elements than Q when S < D); elided at num_heads==1.
    scale = float(num_heads) ** 0.5
    if scale != 1.0:
        s = s * scale

    # Softmax over the last dim. approx reciprocal uses the otherwise-idle EUP slot;
    # one Newton step restores full f32 accuracy for the parity check.
    m = jnp.max(s, axis=-1, keepdims=True)
    e = jnp.exp(s - m)
    denom = jnp.sum(e, axis=-1, keepdims=True)
    r = pl.reciprocal(denom, approx=True)
    r = r * (2.0 - denom * r)
    p_attn = e * r

    if 0.0 < dropout_p < 1.0:
        # Integer threshold compare on raw PRNG bits: keep iff bits >= p * 2^32.
        pltpu.prng_seed(seed_ref[0])
        thresh = jnp.uint32(min(int(dropout_p * 4294967296.0), 4294967295))
        inv_keep = 1.0 / (1.0 - dropout_p)
        bits = pltpu.bitcast(pltpu.prng_random_bits(p_attn.shape), jnp.uint32)
        p_attn = jnp.where(bits >= thresh, p_attn * inv_keep, 0.0)

    out = lax.dot_general(p_attn, v, (((2,), (1,)), ((0,), (0,))),
                          preferred_element_type=jnp.float32)                  # (B, S, D)
    o_ref[...] = out.astype(o_ref.dtype)


def _attn_kernel(x_ref, w_ref, b_ref, o_ref, *, num_heads):
    _attn_compute(x_ref, w_ref, b_ref, o_ref,
                  num_heads=num_heads, dropout_p=0.0, seed_ref=None)


def _attn_kernel_dropout(seed_ref, x_ref, w_ref, b_ref, o_ref, *, num_heads, dropout_p):
    _attn_compute(x_ref, w_ref, b_ref, o_ref,
                  num_heads=num_heads, dropout_p=dropout_p, seed_ref=seed_ref)


def attention_forward(x, w3, b3, *, num_heads, dropout_p, seed=None):
    """x: (B,S,D); w3: (3,D,D) stacked Wq/Wk/Wv (in,out layout); b3: (3,1,D) stacked biases."""
    B, S, D = x.shape
    out_shape = jax.ShapeDtypeStruct((B, S, D), x.dtype)

    if dropout_p >= 1.0:
        # dropout(p=1, training=True) zeros the softmax output -> P @ V == 0 exactly.
        # No Pallas launch: a broadcast-of-zero is free and fusable into consumers.
        return jnp.zeros((B, S, D), x.dtype)

    def vmem():
        return pl.BlockSpec(memory_space=pltpu.MemorySpace.VMEM)

    # NOTE: whole-problem-in-one-VMEM-block is fine at ~20 KB; if S ever grows, a KV-tiled
    # (flash-style) grid will be needed earlier on v7x (64 MiB VMEM) than on v5e/v6e.
    if 0.0 < dropout_p < 1.0:
        if seed is None:
            raise ValueError("seed (int32 array of shape (1,)) required when 0 < dropout_p < 1")
        kernel = functools.partial(_attn_kernel_dropout,
                                   num_heads=num_heads, dropout_p=float(dropout_p))
        return pl.pallas_call(
            kernel,
            out_shape=out_shape,
            in_specs=[pl.BlockSpec(memory_space=pltpu.MemorySpace.SMEM),
                      vmem(), vmem(), vmem()],
            out_specs=vmem(),
        )(seed, x, w3, b3)

    kernel = functools.partial(_attn_kernel, num_heads=num_heads)
    return pl.pallas_call(
        kernel,
        out_shape=out_shape,
        in_specs=[vmem(), vmem(), vmem()],
        out_specs=vmem(),
    )(x, w3, b3)


def reference_forward(x, w, b, *, num_heads, dropout_p):
    # Pure-JAX reference (dropout handled only for the deterministic p>=1 / p==0 cases).
    qkv = jnp.einsum("bsd,de->bse", x, w) + b[0]
    D = x.shape[-1]
    q, k, v = qkv[..., :D], qkv[..., D:2 * D], qkv[..., 2 * D:]
    s = jnp.einsum("bqd,bkd->bqk", q, k) * (float(num_heads) ** 0.5)
    p_attn = jax.nn.softmax(s, axis=-1)
    if dropout_p >= 1.0:
        p_attn = jnp.zeros_like(p_attn)
    return jnp.einsum("bqk,bkd->bqd", p_attn, v)


if __name__ == "__main__":
    # Keep kernel and pure-JAX reference matmuls at matching (full f32) precision.
    jax.config.update("jax_default_matmul_precision", "highest")

    # Module hyperparameters (num_heads / dropout_p from the script; hidden dim = 32 so the
    # lane axis is sane -- the original script's qkv_dim=1 is degenerate for TPU layout).
    num_heads = 1
    qkv_dim = 32
    dropout_p = 1.0

    B, S, D = 2, 8, qkv_dim

    key = jax.random.PRNGKey(0)
    kx, kw, kb = jax.random.split(key, 3)

    # Deterministic parameter init matching torch.nn.Linear's U(-1/sqrt(in), 1/sqrt(in)).
    bound = 1.0 / (qkv_dim ** 0.5)
    w = jax.random.uniform(kw, (D, 3 * D), jnp.float32, -bound, bound)  # (in, out) layout
    b = jax.random.uniform(kb, (1, 3 * D), jnp.float32, -bound, bound)

    # Split the fused Linear into stacked per-Q/K/V weights once, on the host side.
    w3 = jnp.stack([w[:, :D], w[:, D:2 * D], w[:, 2 * D:]])   # (3, D, D)
    b3 = jnp.stack([b[:, :D], b[:, D:2 * D], b[:, 2 * D:]])   # (3, 1, D)

    x = jax.random.normal(kx, (B, S, D), jnp.float32)
    seed = jnp.array([0], dtype=jnp.int32)

    # 1) Shipped config: dropout_p = 1 -> output is exactly zero (no kernel launch).
    out = jax.block_until_ready(
        attention_forward(x, w3, b3, num_heads=num_heads, dropout_p=dropout_p, seed=seed))
    ref = reference_forward(x, w, b, num_heads=num_heads, dropout_p=dropout_p)
    assert out.shape == (B, S, D)
    assert jnp.allclose(out, ref, atol=1e-5, rtol=1e-5)

    # 2) Full attention Pallas path (no dropout), validated against the pure-JAX reference.
    out0 = jax.block_until_ready(
        attention_forward(x, w3, b3, num_heads=num_heads, dropout_p=0.0, seed=seed))
    ref0 = reference_forward(x, w, b, num_heads=num_heads, dropout_p=0.0)
    assert jnp.allclose(out0, ref0, atol=1e-4, rtol=1e-4)

    print("KERNEL_OK")
</pallas_src>

<mosaic_0001>
module attributes {stable_mosaic.version = 11 : i64} {
  func.func @_attn_kernel(%arg0: memref<2x8x32xf32, #tpu.memory_space<vmem>>, %arg1: memref<3x32x32xf32, #tpu.memory_space<vmem>>, %arg2: memref<3x1x32xf32, #tpu.memory_space<vmem>>, %arg3: memref<2x8x32xf32, #tpu.memory_space<vmem>>) attributes {dimension_semantics = [], scalar_prefetch = 0 : i64, scratch_operands = 0 : i64, tpu.core_type = #tpu.core_type<tc>} {
    %c0 = arith.constant 0 : index
    %c0_0 = arith.constant 0 : index
    %c0_1 = arith.constant 0 : index
    %0 = vector.load %arg0[%c0, %c0_0, %c0_1] : memref<2x8x32xf32, #tpu.memory_space<vmem>>, vector<2x8x32xf32>
    %1 = vector.shape_cast %0 : vector<2x8x32xf32> to vector<16x32xf32>
    %c0_2 = arith.constant 0 : index
    %c0_3 = arith.constant 0 : index
    %c0_4 = arith.constant 0 : index
    %2 = vector.load %arg1[%c0_2, %c0_3, %c0_4] : memref<3x32x32xf32, #tpu.memory_space<vmem>>, vector<1x32x32xf32>
    %3 = vector.shape_cast %2 : vector<1x32x32xf32> to vector<32x32xf32>
    %cst = arith.constant dense<0.000000e+00> : vector<16x32xf32>
    %4 = tpu.matmul %1, %3, %cst {dimension_numbers = #tpu.dot_dimension_numbers<[1], [0], [0], [1], [0, 0, 1, 1], [], []>, precision = #tpu.contract_precision<fp32>} : vector<16x32xf32>, vector<32x32xf32>, vector<16x32xf32> -> vector<16x32xf32>
    %c0_5 = arith.constant 0 : index
    %c0_6 = arith.constant 0 : index
    %c0_7 = arith.constant 0 : index
    %5 = vector.load %arg2[%c0_5, %c0_6, %c0_7] : memref<3x1x32xf32, #tpu.memory_space<vmem>>, vector<1x1x32xf32>
    %6 = vector.shape_cast %5 : vector<1x1x32xf32> to vector<1x32xf32>
    %7 = vector.broadcast %6 : vector<1x32xf32> to vector<16x32xf32>
    %8 = arith.addf %4, %7 : vector<16x32xf32>
    %c1 = arith.constant 1 : index
    %c0_8 = arith.constant 0 : index
    %c0_9 = arith.constant 0 : index
    %9 = vector.load %arg1[%c1, %c0_8, %c0_9] : memref<3x32x32xf32, #tpu.memory_space<vmem>>, vector<1x32x32xf32>
    %10 = vector.shape_cast %9 : vector<1x32x32xf32> to vector<32x32xf32>
    %cst_10 = arith.constant dense<0.000000e+00> : vector<16x32xf32>
    %11 = tpu.matmul %1, %10, %cst_10 {dimension_numbers = #tpu.dot_dimension_numbers<[1], [0], [0], [1], [0, 0, 1, 1], [], []>, precision = #tpu.contract_precision<fp32>} : vector<16x32xf32>, vector<32x32xf32>, vector<16x32xf32> -> vector<16x32xf32>
    %c1_11 = arith.constant 1 : index
    %c0_12 = arith.constant 0 : index
    %c0_13 = arith.constant 0 : index
    %12 = vector.load %arg2[%c1_11, %c0_12, %c0_13] : memref<3x1x32xf32, #tpu.memory_space<vmem>>, vector<1x1x32xf32>
    %13 = vector.shape_cast %12 : vector<1x1x32xf32> to vector<1x32xf32>
    %14 = vector.broadcast %13 : vector<1x32xf32> to vector<16x32xf32>
    %15 = arith.addf %11, %14 : vector<16x32xf32>
    %c2 = arith.constant 2 : index
    %c0_14 = arith.constant 0 : index
    %c0_15 = arith.constant 0 : index
    %16 = vector.load %arg1[%c2, %c0_14, %c0_15] : memref<3x32x32xf32, #tpu.memory_space<vmem>>, vector<1x32x32xf32>
    %17 = vector.shape_cast %16 : vector<1x32x32xf32> to vector<32x32xf32>
    %cst_16 = arith.constant dense<0.000000e+00> : vector<16x32xf32>
    %18 = tpu.matmul %1, %17, %cst_16 {dimension_numbers = #tpu.dot_dimension_numbers<[1], [0], [0], [1], [0, 0, 1, 1], [], []>, precision = #tpu.contract_precision<fp32>} : vector<16x32xf32>, vector<32x32xf32>, vector<16x32xf32> -> vector<16x32xf32>
    %c2_17 = arith.constant 2 : index
    %c0_18 = arith.constant 0 : index
    %c0_19 = arith.constant 0 : index
    %19 = vector.load %arg2[%c2_17, %c0_18, %c0_19] : memref<3x1x32xf32, #tpu.memory_space<vmem>>, vector<1x1x32xf32>
    %20 = vector.shape_cast %19 : vector<1x1x32xf32> to vector<1x32xf32>
    %21 = vector.broadcast %20 : vector<1x32xf32> to vector<16x32xf32>
    %22 = arith.addf %18, %21 : vector<16x32xf32>
    %23 = vector.shape_cast %8 : vector<16x32xf32> to vector<2x8x32xf32>
    %24 = vector.shape_cast %15 : vector<16x32xf32> to vector<2x8x32xf32>
    %25 = vector.shape_cast %22 : vector<16x32xf32> to vector<2x8x32xf32>
    %cst_20 = arith.constant dense<0.000000e+00> : vector<2x8x8xf32>
    %26 = tpu.matmul %23, %24, %cst_20 {dimension_numbers = #tpu.dot_dimension_numbers<[2], [2], [1], [1], [0, 0, 0, 1, 1, 1], [0], [0]>, precision = #tpu.contract_precision<fp32>} : vector<2x8x32xf32>, vector<2x8x32xf32>, vector<2x8x8xf32> -> vector<2x8x8xf32>
    %cst_21 = arith.constant dense<0xFF800000> : vector<2x8xf32>
    %27 = vector.multi_reduction <maximumf>, %26, %cst_21 [2] : vector<2x8x8xf32> to vector<2x8xf32>
    %28 = vector.shape_cast %27 : vector<2x8xf32> to vector<2x8x1xf32>
    %29 = vector.broadcast %28 : vector<2x8x1xf32> to vector<2x8x8xf32>
    %30 = arith.subf %26, %29 : vector<2x8x8xf32>
    %31 = math.exp %30 : vector<2x8x8xf32>
    %cst_22 = arith.constant dense<0.000000e+00> : vector<2x8xf32>
    %32 = vector.multi_reduction <add>, %31, %cst_22 [2] : vector<2x8x8xf32> to vector<2x8xf32>
    %33 = vector.shape_cast %32 : vector<2x8xf32> to vector<2x8x1xf32>
    %34 = tpu.reciprocal %33 {approx = true} : vector<2x8x1xf32> -> vector<2x8x1xf32>
    %35 = arith.mulf %33, %34 : vector<2x8x1xf32>
    %cst_23 = arith.constant 2.000000e+00 : f32
    %36 = vector.broadcast %cst_23 : f32 to vector<2x8x1xf32>
    %37 = arith.subf %36, %35 : vector<2x8x1xf32>
    %38 = arith.mulf %34, %37 : vector<2x8x1xf32>
    %39 = vector.broadcast %38 : vector<2x8x1xf32> to vector<2x8x8xf32>
    %40 = arith.mulf %31, %39 : vector<2x8x8xf32>
    %cst_24 = arith.constant dense<0.000000e+00> : vector<2x8x32xf32>
    %41 = tpu.matmul %40, %25, %cst_24 {dimension_numbers = #tpu.dot_dimension_numbers<[2], [1], [1], [2], [0, 0, 0, 1, 1, 2], [0], [0]>, precision = #tpu.contract_precision<fp32>} : vector<2x8x8xf32>, vector<2x8x32xf32>, vector<2x8x32xf32> -> vector<2x8x32xf32>
    %c0_25 = arith.constant 0 : index
    %c0_26 = arith.constant 0 : index
    %c0_27 = arith.constant 0 : index
    %42 = vector.load %arg3[%c0_25, %c0_26, %c0_27] : memref<2x8x32xf32, #tpu.memory_space<vmem>>, vector<2x8x32xf32>
    tpu.vector_store %arg3[%c0_25, %c0_26, %c0_27], %41 {strides = array<i32>} : memref<2x8x32xf32, #tpu.memory_space<vmem>>, vector<2x8x32xf32>,
    return
  }
}

</mosaic_0001>

<bundles_post_ra>
// kernel: tpu_custom_call.1
= control target key start
LH: loop header
LB: loop body
LE: loop exit
PB: predicated region body
PF: predicated region fallthrough
CT: control target
= control target key end

     0   :  { %8 = vsyncpa [#allocation3], 0  ;;  %s4429_s0 = inlined_call_operand.hbm [shape: f32[2,8,32], index: 0, kind: input, shape index: {}]   ;;  %s4430_s1 = inlined_call_operand.hbm [shape: f32[3,32,32], index: 1, kind: input, shape index: {}]   ;;  %s4431_s2 = inlined_call_operand.vmem [shape: f32[3,1,32], index: 2, kind: input, shape index: {}]   ;;  %s4432_s3 = inlined_call_operand.hbm [shape: f32[2,8,32], index: 3, kind: output, shape index: {}]  }
   0x1   :  { %9 = vsyncpa [#allocation6], 0 }
   0x2   :  { %10 = vsyncpa [#allocation4], 0  ;;  %s4084_s12 = smov [#allocation2]  }
   0x3   :  { %s16_s13 = sshll.u32 %s4084_s12, 4  ;;  %s17_s13 = int_to_ptr.vmem [resolvable:$true] %s16_s13 }
   0x4   :  { %s4026_s14 = scalar_lea.vmem %s17_s13, 256  ;;  %p4031_p1 = scmp.lt.s32.totalorder %s17_s13, %s17_s13 }
   0x5   :  { %p4027_p0 = scmp.ne.s32.totalorder %s17_s13, %s4026_s14  ;;  %p4032_p2 = scmp.lt.s32.totalorder %s4026_s14, %s4026_s14 }
   0x7   :  { %p4033_p3 = por %p4032_p2, %p4031_p1 }
   0x9   :  { %p4034_p4 = pnand %p4033_p3, %p4027_p0 }
   0xb   :  { %4037 = shalt.err (!%p4034_p4)
}
   0xc   :  { %s4085_s15 = smov 128   ;;  %s4086_s16 = smov 8  }
   0xd   :  { %22 = dma.hbm_to_vmem [thread:$0]  %s4429_s0, 256, %s17_s13, [#allocation3], %s4085_s15, %s4085_s15, %s4086_s16  }
   0xe   :  { %s4087_s19 = smov [#allocation5]  }
   0xf   :  { %s28_s20 = sshll.u32 %s4087_s19, 4  ;;  %s29_s20 = int_to_ptr.vmem [resolvable:$true] %s28_s20 }
  0x10   :  { %s4046_s21 = scalar_lea.vmem %s29_s20, 1536  ;;  %p4051_p6 = scmp.lt.s32.totalorder %s29_s20, %s29_s20 }
  0x11   :  { %p4047_p5 = scmp.ne.s32.totalorder %s29_s20, %s4046_s21  ;;  %p4052_p7 = scmp.lt.s32.totalorder %s4046_s21, %s4046_s21 }
  0x13   :  { %p4053_p8 = por %p4052_p7, %p4051_p6 }
  0x15   :  { %p4054_p9 = pnand %p4053_p8, %p4047_p5 }
  0x17   :  { %4057 = shalt.err (!%p4054_p9)
}
  0x18   :  { %34 = dma.hbm_to_vmem [thread:$0]  %s4430_s1, 1536, %s29_s20, [#allocation6], %s4085_s15, %s4085_s15, %s4086_s16  }
  0x19   :  { %4078 = dma.done.wait [#allocation3], 256  }
  0x1a   :  { %4079 = vsyncadd [#allocation3], 4294967040 }
  0x1b   :  { %4080 = dma.done.wait [#allocation6], 1536  }
  0x1c   :  { %4081 = vsyncadd [#allocation6], 4294965760  ;;  %vm56_vm0 = vcmask 261120   ;;  %v48_v0 = vld [vmem:[#allocation5 + $0x18] sm:$0xff]  ;;  %v47_v1 = vld [vmem:[#allocation5 + $0x10] sm:$0xff]  ;;  %vm4089_vm1 = vmmov 0  }
  0x1d   :  { %v46_v2 = vld [vmem:[#allocation5 + $0x8] sm:$0xff]  ;;  %v4123_v3 = vand.u32 4294901760, %v48_v0  ;;  %v4125_v4 = vand.u32 4294901760, %v47_v1  ;;  %v45_v6 = vld [vmem:[#allocation5] sm:$0xff]  ;;  %v43_v7 = vld [vmem:[#allocation2] sm:$0xff]  ;;  %vm2577_vm2 = vcmask 64512  }
  0x1e   :  { %v4127_v5 = vand.u32 4294901760, %v46_v2  ;;  %v44_v8 = vld [vmem:[#allocation2 + $0x8] sm:$0xff]  ;;  %v4129_v9 = vand.u32 4294901760, %v45_v6  ;;  %v58_v10 = vsel %vm56_vm0, %v43_v7, 0  ;;  %v594_v39 = vld [vmem:[#allocation5 + $0x30] sm:$0xff]  ;;  %v593_v42 = vld [vmem:[#allocation5 + $0x28] sm:$0xff] }
  0x1f   :  { %v61_v11 = vsel %vm56_vm0, %v44_v8, 0  ;;  %3685 = vmatprep.subr.mxu0 %v4123_v3  ;;  %v178_v12 = vsub.f32 %v48_v0, %v4123_v3  ;;  %v4135_v13 = vand.u32 4294901760, %v58_v10  ;;  %v185_v14 = vsub.f32 %v47_v1, %v4125_v4  ;;  %v595_v38 = vld [vmem:[#allocation5 + $0x38] sm:$0xff]  ;;  %v592_v43 = vld [vmem:[#allocation5 + $0x20] sm:$0xff]  ;;  %v1135_v0 = vld [vmem:[#allocation5 + $0x50] sm:$0xff] }
  0x20   :  { %v4138_v15 = vand.u32 4294901760, %v61_v11  ;;  %3686 = vmatpush3.msra.mxu0 %v4123_v3  ;;  %v192_v16 = vsub.f32 %v46_v2, %v4127_v5  ;;  %v199_v17 = vsub.f32 %v45_v6, %v4129_v9  ;;  %v4180_v40 = vand.u32 4294901760, %v595_v38  ;;  %v1136_v62 = vld [vmem:[#allocation5 + $0x58] sm:$0xff]  ;;  %v1133_v7 = vld [vmem:[#allocation5 + $0x40] sm:$0xff] }
  0x21   :  { %3687 = vmatprep.subr.mxu0 %v4125_v4  ;;  %v179_v18 = vand.u32 4294901760, %v178_v12  ;;  %v4145_v19 = vsub.f32 %v58_v10, %v4135_v13  ;;  %v186_v20 = vand.u32 4294901760, %v185_v14  ;;  %3704 = vmatprep.mubr.f32.mxu1 %v4135_v13  ;;  %v4185_v41 = vand.u32 4294901760, %v594_v39 }
  0x22   :  { %v4148_v21 = vsub.f32 %v61_v11, %v4138_v15  ;;  %3688 = vmatpush3.msra.mxu0 %v4125_v4  ;;  %v4152_v22 = vand.u32 4294901760, %v192_v16  ;;  %v4154_v23 = vand.u32 4294901760, %v199_v17  ;;  %v719_v44 = vsub.f32 %v595_v38, %v4180_v40 }
  0x23   :  { %3689 = vmatprep.subr.mxu0 %v4127_v5  ;;  %v180_v24 = vsub.f32 %v178_v12, %v179_v18  ;;  %v4158_v25 = vand.u32 4294901760, %v4145_v19  ;;  %v187_v26 = vsub.f32 %v185_v14, %v186_v20  ;;  %v4191_v45 = vand.u32 4294901760, %v593_v42 }
  0x24   :  { %v4161_v27 = vand.u32 4294901760, %v4148_v21  ;;  %3690 = vmatpush3.msra.mxu0 %v4127_v5  ;;  %v194_v28 = vsub.f32 %v192_v16, %v4152_v22  ;;  %v201_v29 = vsub.f32 %v199_v17, %v4154_v23  ;;  %v726_v46 = vsub.f32 %v594_v39, %v4185_v41 }
  0x25   :  { %3691 = vmatprep.subr.mxu0 %v4129_v9  ;;  %v181_v30 = vand.u32 4294901760, %v180_v24  ;;  %v135_v31 = vsub.f32 %v4145_v19, %v4158_v25  ;;  %v188_v32 = vand.u32 4294901760, %v187_v26  ;;  %v4197_v47 = vand.u32 4294901760, %v592_v43 }
  0x26   :  { %v145_v33 = vsub.f32 %v4148_v21, %v4161_v27  ;;  %3692 = vmatpush3.msra.mxu0 %v4129_v9  ;;  %v195_v36 = vand.u32 4294901760, %v194_v28  ;;  %v202_v37 = vand.u32 4294901760, %v201_v29  ;;  %v4201_v48 = vand.u32 4294901760, %v719_v44 }
  0x27   :  { %3696 = vmatprep.subr.mxu1 %v181_v30  ;;  %v4172_v34 = vand.u32 4294901760, %v135_v31  ;;  %3707 = vmatprep.subr.mxu0 %v178_v12  ;;  %v733_v49 = vsub.f32 %v593_v42, %v4191_v45  ;;  %v727_v50 = vand.u32 4294901760, %v726_v46  ;;  %v740_v51 = vsub.f32 %v592_v43, %v4197_v47  ;;  %v3526_v43 = vld [vmem:[%s4431_s2 + $0x1] ss:$0 sm:$0xff] }
  0x28   :  { %v4174_v35 = vand.u32 4294901760, %v145_v33  ;;  %3697 = vmatpush3.msra.mxu1 %v181_v30  ;;  %v721_v52 = vsub.f32 %v719_v44, %v4201_v48  ;;  %v4262_v63 = vand.u32 4294901760, %v1136_v62  ;;  %v4265_v1 = vand.u32 4294901760, %v1135_v0 }
  0x29   :  { %3693 = vmatprep.mubr.f32.mxu0 %v4172_v34  ;;  %3698 = vmatprep.subr.mxu1 %v188_v32  ;;  %v734_v53 = vand.u32 4294901760, %v733_v49  ;;  %v728_v54 = vsub.f32 %v726_v46, %v727_v50  ;;  %v741_v55 = vand.u32 4294901760, %v740_v51  ;;  %v1179_v10 = vand.u32 4294901760, %v1133_v7 }
  0x2a   :  { %3694 = vmatmul.mubr.f32.vlgmr.msra.gmra.mxu0 %v4174_v35  ;;  %3699 = vmatpush3.msra.mxu1 %v188_v32  ;;  %v722_v56 = vand.u32 4294901760, %v721_v52  ;;  %v1260_v2 = vsub.f32 %v1136_v62, %v4262_v63  ;;  %v1267_v6 = vsub.f32 %v1135_v0, %v4265_v1 }
  0x2b   :  { %3708 = vmatpush3.msra.mxu0 %v178_v12  ;;  %3700 = vmatprep.subr.mxu1 %v195_v36  ;;  %v735_v57 = vsub.f32 %v733_v49, %v734_v53  ;;  %v729_v58 = vand.u32 4294901760, %v728_v54  ;;  %v742_v59 = vsub.f32 %v740_v51, %v741_v55 }
  0x2c   :  { %3709 = vmatprep.subr.mxu0 %v185_v14  ;;  %3701 = vmatpush3.msra.mxu1 %v195_v36 }
  0x2d   :  { %3710 = vmatpush3.msra.mxu0 %v185_v14  ;;  %3702 = vmatprep.subr.mxu1 %v202_v37  ;;  %v736_v60 = vand.u32 4294901760, %v735_v57  ;;  %v743_v61 = vand.u32 4294901760, %v742_v59 }
  0x2e   :  { %3711 = vmatprep.subr.mxu0 %v192_v16  ;;  %3703 = vmatpush3.msra.mxu1 %v202_v37 }
  0x2f   :  { %3712 = vmatpush3.msra.mxu0 %v192_v16  ;;  %3705 = vmatmul.mubr.f32.vlgmr.msra.gmra.mxu1 %v4138_v15 }
  0x30   :  { %3713 = vmatprep.subr.mxu0 %v199_v17  ;;  %3718 = vmatprep.subr.mxu1 %v4123_v3 }
  0x31   :  { %3714 = vmatpush3.msra.mxu0 %v199_v17  ;;  %3715 = vmatprep.mubr.f32.mxu0 %v4145_v19  ;;  %v1281_v17 = vsub.f32 %v1133_v7, %v1179_v10 }
  0x32   :  { %3719 = vmatpush3.msra.mxu1 %v4123_v3  ;;  %3716 = vmatmul.mubr.f32.vlgmr.msra.gmra.mxu0 %v4148_v21 }
  0x33   :  { %3720 = vmatprep.subr.mxu1 %v4125_v4  ;;  %3729 = vmatprep.subr.mxu0 %v179_v18 }
  0x34   :  { %3721 = vmatpush3.msra.mxu1 %v4125_v4  ;;  %3730 = vmatpush3.msra.mxu0 %v179_v18 }
  0x35   :  { %3722 = vmatprep.subr.mxu1 %v4127_v5  ;;  %3731 = vmatprep.subr.mxu0 %v186_v20 }
  0x36   :  { %3723 = vmatpush3.msra.mxu1 %v4127_v5  ;;  %3732 = vmatpush3.msra.mxu0 %v186_v20 }
  0x37   :  { %3724 = vmatprep.subr.mxu1 %v4129_v9  ;;  %3733 = vmatprep.subr.mxu0 %v4152_v22 }
  0x38   :  { %3725 = vmatpush3.msra.mxu1 %v4129_v9  ;;  %3726 = vmatprep.mubr.f32.mxu1 %v4158_v25 }
  0x39   :  { %3734 = vmatpush3.msra.mxu0 %v4152_v22  ;;  %3727 = vmatmul.mubr.f32.vlgmr.msra.gmra.mxu1 %v4161_v27  ;;  %v1282_v22 = vand.u32 4294901760, %v1281_v17 }
  0x3a   :  { %3735 = vmatprep.subr.mxu0 %v4154_v23  ;;  %3740 = vmatprep.subr.mxu1 %v4123_v3 }
  0x3b   :  { %3736 = vmatpush3.msra.mxu0 %v4154_v23  ;;  %3737 = vmatprep.mubr.f32.mxu0 %v4135_v13  ;;  %v1283_v24 = vsub.f32 %v1281_v17, %v1282_v22 }
  0x3c   :  { %3741 = vmatpush3.msra.mxu1 %v4123_v3  ;;  %3738 = vmatmul.mubr.f32.vlgmr.msra.gmra.mxu0 %v4138_v15  ;;  %v1134_v3 = vld [vmem:[#allocation5 + $0x48] sm:$0xff] }
  0x3d   :  { %3742 = vmatprep.subr.mxu1 %v4125_v4  ;;  %3751 = vmatprep.subr.mxu0 %v4180_v40  ;;  %v1284_v26 = vand.u32 4294901760, %v1283_v24 }
  0x3e   :  { %3743 = vmatpush3.msra.mxu1 %v4125_v4  ;;  %3752 = vmatpush3.msra.mxu0 %v4180_v40  ;;  %v1261_v4 = vand.u32 4294901760, %v1260_v2 }
  0x3f   :  { %3744 = vmatprep.subr.mxu1 %v4127_v5  ;;  %3753 = vmatprep.subr.mxu0 %v4185_v41 }
  0x40   :  { %3745 = vmatpush3.msra.mxu1 %v4127_v5  ;;  %3754 = vmatpush3.msra.mxu0 %v4185_v41  ;;  %v4270_v5 = vand.u32 4294901760, %v1134_v3  ;;  %v1262_v8 = vsub.f32 %v1260_v2, %v1261_v4 }
  0x41   :  { %3746 = vmatprep.subr.mxu1 %v4129_v9  ;;  %3755 = vmatprep.subr.mxu0 %v4191_v45 }
  0x42   :  { %3747 = vmatpush3.msra.mxu1 %v4129_v9  ;;  %3748 = vmatprep.mubr.f32.mxu1 %v4135_v13  ;;  %v1268_v9 = vand.u32 4294901760, %v1267_v6  ;;  %v1274_v11 = vsub.f32 %v1134_v3, %v4270_v5  ;;  %v1263_v12 = vand.u32 4294901760, %v1262_v8 }
  0x43   :  { %3756 = vmatpush3.msra.mxu0 %v4191_v45  ;;  %3749 = vmatmul.mubr.f32.vlgmr.msra.gmra.mxu1 %v4138_v15 }
  0x44   :  { %3757 = vmatprep.subr.mxu0 %v4197_v47  ;;  %3762 = vmatprep.subr.mxu1 %v722_v56  ;;  %v1269_v14 = vsub.f32 %v1267_v6, %v1268_v9  ;;  %v1275_v16 = vand.u32 4294901760, %v1274_v11 }
  0x45   :  { %3758 = vmatpush3.msra.mxu0 %v4197_v47  ;;  %3763 = vmatpush3.msra.mxu1 %v722_v56 }
  0x46   :  { %3759 = vmatprep.mubr.f32.mxu0 %v4172_v34  ;;  %3764 = vmatprep.subr.mxu1 %v729_v58  ;;  %v1270_v18 = vand.u32 4294901760, %v1269_v14  ;;  %v1276_v20 = vsub.f32 %v1274_v11, %v1275_v16 }
  0x47   :  { %3773 = vmatprep.subr.mxu0 %v719_v44  ;;  %3760 = vmatmul.mubr.f32.vlgmr.msra.gmra.mxu0 %v4174_v35 }
  0x48   :  { %3765 = vmatpush3.msra.mxu1 %v729_v58  ;;  %3774 = vmatpush3.msra.mxu0 %v719_v44  ;;  %v1277_v23 = vand.u32 4294901760, %v1276_v20 }
  0x49   :  { %3766 = vmatprep.subr.mxu1 %v736_v60  ;;  %3775 = vmatprep.subr.mxu0 %v726_v46 }
  0x4a   :  { %3767 = vmatpush3.msra.mxu1 %v736_v60  ;;  %3776 = vmatpush3.msra.mxu0 %v726_v46 }
  0x4b   :  { %3768 = vmatprep.subr.mxu1 %v743_v61  ;;  %3777 = vmatprep.subr.mxu0 %v733_v49 }
  0x4c   :  { %3769 = vmatpush3.msra.mxu1 %v743_v61  ;;  %3770 = vmatprep.mubr.f32.mxu1 %v4135_v13 }
  0x4d   :  { %3778 = vmatpush3.msra.mxu0 %v733_v49  ;;  %3771 = vmatmul.mubr.f32.vlgmr.msra.gmra.mxu1 %v4138_v15 }
  0x4e   :  { %3779 = vmatprep.subr.mxu0 %v740_v51  ;;  %3784 = vmatprep.subr.mxu1 %v4180_v40 }
  0x4f   :  { %3780 = vmatpush3.msra.mxu0 %v740_v51  ;;  %3781 = vmatprep.mubr.f32.mxu0 %v4145_v19 }
  0x50   :  { %3785 = vmatpush3.msra.mxu1 %v4180_v40  ;;  %3782 = vmatmul.mubr.f32.vlgmr.msra.gmra.mxu0 %v4148_v21 }
  0x51   :  { %3786 = vmatprep.subr.mxu1 %v4185_v41  ;;  %3795 = vmatprep.subr.mxu0 %v4201_v48 }
  0x52   :  { %3787 = vmatpush3.msra.mxu1 %v4185_v41  ;;  %3796 = vmatpush3.msra.mxu0 %v4201_v48 }
  0x53   :  { %3788 = vmatprep.subr.mxu1 %v4191_v45  ;;  %3797 = vmatprep.subr.mxu0 %v727_v50 }
  0x54   :  { %3789 = vmatpush3.msra.mxu1 %v4191_v45  ;;  %3798 = vmatpush3.msra.mxu0 %v727_v50 }
  0x55   :  { %3790 = vmatprep.subr.mxu1 %v4197_v47  ;;  %3799 = vmatprep.subr.mxu0 %v734_v53 }
  0x56   :  { %3791 = vmatpush3.msra.mxu1 %v4197_v47  ;;  %3792 = vmatprep.mubr.f32.mxu1 %v4158_v25 }
  0x57   :  { %3800 = vmatpush3.msra.mxu0 %v734_v53  ;;  %3793 = vmatmul.mubr.f32.vlgmr.msra.gmra.mxu1 %v4161_v27 }
  0x58   :  { %3801 = vmatprep.subr.mxu0 %v741_v55  ;;  %3806 = vmatprep.subr.mxu1 %v4180_v40 }
  0x59   :  { %3802 = vmatpush3.msra.mxu0 %v741_v55  ;;  %3803 = vmatprep.mubr.f32.mxu0 %v4135_v13 }
  0x5a   :  { %3807 = vmatpush3.msra.mxu1 %v4180_v40  ;;  %3804 = vmatmul.mubr.f32.vlgmr.msra.gmra.mxu0 %v4138_v15 }
  0x5b   :  { %3808 = vmatprep.subr.mxu1 %v4185_v41  ;;  %3814 = vmatprep.mubr.f32.mxu1 %v4135_v13 }
  0x5c   :  { %3809 = vmatpush3.msra.mxu1 %v4185_v41  ;;  %3825 = vmatprep.mubr.f32.mxu0 %v4172_v34 }
  0x5d   :  { %3810 = vmatprep.subr.mxu1 %v4191_v45  ;;  %3817 = vmatprep.subr.mxu0 %v4262_v63 }
  0x5e   :  { %3811 = vmatpush3.msra.mxu1 %v4191_v45  ;;  %3818 = vmatpush3.msra.mxu0 %v4262_v63 }
  0x5f   :  { %3812 = vmatprep.subr.mxu1 %v4197_v47  ;;  %3819 = vmatprep.subr.mxu0 %v4265_v1 }
  0x60   :  { %3813 = vmatpush3.msra.mxu1 %v4197_v47  ;;  %3820 = vmatpush3.msra.mxu0 %v4265_v1 }
  0x61   :  { %3815 = vmatmul.mubr.f32.vlgmr.msra.gmra.mxu1 %v4138_v15  ;;  %3821 = vmatprep.subr.mxu0 %v4270_v5 }
  0x62   :  { %3836 = vmatprep.mubr.f32.mxu1 %v4135_v13  ;;  %3822 = vmatpush3.msra.mxu0 %v4270_v5 }
  0x63   :  { %3823 = vmatprep.subr.mxu0 %v1179_v10  ;;  %3828 = vmatprep.subr.mxu1 %v1263_v12 }
  0x64   :  { %3824 = vmatpush3.msra.mxu0 %v1179_v10  ;;  %3829 = vmatpush3.msra.mxu1 %v1263_v12 }
  0x65   :  { %3839 = vmatprep.subr.mxu0 %v1260_v2  ;;  %3826 = vmatmul.mubr.f32.vlgmr.msra.gmra.mxu0 %v4174_v35 }
  0x66   :  { %3830 = vmatprep.subr.mxu1 %v1270_v18  ;;  %3840 = vmatpush3.msra.mxu0 %v1260_v2 }
  0x67   :  { %3831 = vmatpush3.msra.mxu1 %v1270_v18  ;;  %3841 = vmatprep.subr.mxu0 %v1267_v6 }
  0x68   :  { %3832 = vmatprep.subr.mxu1 %v1277_v23  ;;  %3842 = vmatpush3.msra.mxu0 %v1267_v6 }
  0x69   :  { %3833 = vmatpush3.msra.mxu1 %v1277_v23  ;;  %3843 = vmatprep.subr.mxu0 %v1274_v11 }
  0x6a   :  { %3834 = vmatprep.subr.mxu1 %v1284_v26  ;;  %3844 = vmatpush3.msra.mxu0 %v1274_v11 }
  0x6b   :  { %3835 = vmatpush3.msra.mxu1 %v1284_v26  ;;  %3845 = vmatprep.subr.mxu0 %v1281_v17 }
  0x6c   :  { %3850 = vmatprep.subr.mxu1 %v4262_v63  ;;  %3837 = vmatmul.mubr.f32.vlgmr.msra.gmra.mxu1 %v4138_v15 }
  0x6d   :  { %3851 = vmatpush3.msra.mxu1 %v4262_v63  ;;  %3846 = vmatpush3.msra.mxu0 %v1281_v17 }
  0x6e   :  { %3852 = vmatprep.subr.mxu1 %v4265_v1  ;;  %3847 = vmatprep.mubr.f32.mxu0 %v4145_v19  ;;  %v4088_v19 = vmov 0.0  }
  0x6f   :  { %3853 = vmatpush3.msra.mxu1 %v4265_v1  ;;  %3861 = vmatprep.subr.mxu0 %v1261_v4 }
  0x70   :  { %3854 = vmatprep.subr.mxu1 %v4270_v5  ;;  %3848 = vmatmul.mubr.f32.vlgmr.msra.gmra.mxu0 %v4148_v21 }
  0x71   :  { %3855 = vmatpush3.msra.mxu1 %v4270_v5  ;;  %3862 = vmatpush3.msra.mxu0 %v1261_v4 }
  0x72   :  { %3856 = vmatprep.subr.mxu1 %v1179_v10  ;;  %3858 = vmatprep.mubr.f32.mxu1 %v4158_v25 }
  0x73   :  { %3857 = vmatpush3.msra.mxu1 %v1179_v10  ;;  %3863 = vmatprep.subr.mxu0 %v1268_v9 }
  0x74   :  { %3872 = vmatprep.subr.mxu1 %v4262_v63  ;;  %3859 = vmatmul.mubr.f32.vlgmr.msra.gmra.mxu1 %v4161_v27 }
  0x75   :  { %3864 = vmatpush3.msra.mxu0 %v1268_v9  ;;  %3873 = vmatpush3.msra.mxu1 %v4262_v63 }
  0x76   :  { %3865 = vmatprep.subr.mxu0 %v1275_v16  ;;  %3874 = vmatprep.subr.mxu1 %v4265_v1 }
  0x77   :  { %3866 = vmatpush3.msra.mxu0 %v1275_v16  ;;  %3875 = vmatpush3.msra.mxu1 %v4265_v1 }
  0x78   :  { %3867 = vmatprep.subr.mxu0 %v1282_v22  ;;  %3876 = vmatprep.subr.mxu1 %v4270_v5 }
  0x79   :  { %3868 = vmatpush3.msra.mxu0 %v1282_v22  ;;  %3869 = vmatprep.mubr.f32.mxu0 %v4135_v13 }
  0x7a   :  { %3877 = vmatpush3.msra.mxu1 %v4270_v5  ;;  %3870 = vmatmul.mubr.f32.vlgmr.msra.gmra.mxu0 %v4138_v15 }
  0x7b   :  { %3878 = vmatprep.subr.mxu1 %v1179_v10  ;;  %3880 = vmatprep.mubr.f32.mxu1 %v4135_v13  ;;  %v3524_v13 = vld [vmem:[%s4431_s2] ss:$0 sm:$0xff] }
  0x7c   :  { %3879 = vmatpush3.msra.mxu1 %v1179_v10  ;;  %3883 = vmatprep.subr.mxu0 %v4088_v19 }
  0x7d   :  { %3881 = vmatmul.mubr.f32.vlgmr.msra.gmra.mxu1 %v4138_v15  ;;  %3888 = vmatprep.subr.mxu1 %v4088_v19 }
  0x7e   :  { %3885 = vmatprep.mubr.msk.f32.mxu0 %vm4089_vm1, %v4088_v19  ;;  %3890 = vmatprep.mubr.msk.f32.mxu1 %vm4089_vm1, %v4088_v19 }
  0xea   :  { %v3695_v21 = vpop.f32.mrf.mxu0 }
  0xeb   :  { %v149_v40 = vadd.f32 %v3695_v21, %v3524_v13 }
  0xec   :  { %v138_v25 = vpop.f32.mrf.mxu0 }
  0xed   :  { %v139_v28 = vadd.f32 %v3524_v13, %v138_v25 }
  0xef   :  { %v3706_v27 = vpop.f32.mrf.mxu1 }
  0xf0   :  { %v246_v46 = vadd.f32 %v3706_v27, %v149_v40 }
  0xf1   :  { %v239_v29 = vpop.f32.mrf.mxu1 }
  0xf2   :  { %v3717_v15 = vpop.f32.mrf.mxu0  ;;  %v240_v32 = vadd.f32 %v239_v29, %v139_v28 }
  0xf3   :  { %v333_v52 = vadd.f32 %v3717_v15, %v246_v46 }
  0xf4   :  { %v325_v30 = vpop.f32.mrf.mxu0 }
  0xf5   :  { %v326_v35 = vadd.f32 %v325_v30, %v240_v32 }
  0xf9   :  { %v3728_v31 = vpop.f32.mrf.mxu1 }
  0xfa   :  { %v418_v57 = vadd.f32 %v3728_v31, %v333_v52 }
  0xfb   :  { %v409_v34 = vpop.f32.mrf.mxu1 }
  0xfc   :  { %v3739_v33 = vpop.f32.mrf.mxu0  ;;  %v410_v38 = vadd.f32 %v409_v34, %v326_v35  ;;  %v3528_v34 = vld [vmem:[%s4431_s2 + $0x2] ss:$0 sm:$0xff]  ;;  %s4090_s2 = smov [#allocation7]  }
  0xfd   :  { %v507_v0 = vadd.f32 %v3739_v33, %v418_v57  ;;  %s3511_s28 = sshll.u32 %s4090_s2, 4  ;;  %s3512_s28 = int_to_ptr.vmem [resolvable:$true] %s3511_s28 }
  0xfe   :  { %v500_v36 = vpop.f32.mrf.mxu0  ;;  %s4058_s29 = scalar_lea.vmem %s3512_s28, 256  ;;  %p4063_p11 = scmp.lt.s32.totalorder %s3512_s28, %s3512_s28 }
  0xff   :  { %v501_v42 = vadd.f32 %v500_v36, %v410_v38  ;;  %p4059_p10 = scmp.ne.s32.totalorder %s3512_s28, %s4058_s29  ;;  %p4064_p12 = scmp.lt.s32.totalorder %s4058_s29, %s4058_s29 }
 0x101   :  { %p4065_p13 = por %p4064_p12, %p4063_p11 }
 0x103   :  { %v3750_v37 = vpop.f32.mrf.mxu1  ;;  %p4066_p0 = pnand %p4065_p13, %p4059_p10 }
 0x104   :  { %v588_v4 = vadd.f32 %v3750_v37, %v507_v0 }
 0x105   :  { %v581_v41 = vpop.f32.mrf.mxu1 }
 0x106   :  { %v582_v47 = vadd.f32 %v581_v41, %v501_v42  ;;  %v2126_v10 = vsel %vm56_vm0, %v588_v4, 0 }
 0x107   :  { %v3761_v39 = vpop.f32.mrf.mxu0  ;;  %v4316_v16 = vand.u32 4294901760, %v2126_v10 }
 0x108   :  { %v690_v48 = vadd.f32 %v3761_v39, %v3526_v43  ;;  %v1674_v53 = vsel %vm56_vm0, %v582_v47, 0 }
 0x109   :  { %v679_v44 = vpop.f32.mrf.mxu0  ;;  %v4312_v59 = vand.u32 4294901760, %v1674_v53  ;;  %v2198_v24 = vsub.f32 %v2126_v10, %v4316_v16 }
 0x10a   :  { %v680_v49 = vadd.f32 %v3526_v43, %v679_v44 }
 0x10b   :  { %v1746_v1 = vsub.f32 %v1674_v53, %v4312_v59  ;;  %v2199_v13 = vand.u32 4294901760, %v2198_v24 }
 0x10d   :  { %v3772_v45 = vpop.f32.mrf.mxu1  ;;  %v1747_v7 = vand.u32 4294901760, %v1746_v1  ;;  %v2200_v29 = vsub.f32 %v2198_v24, %v2199_v13 }
 0x10e   :  { %v787_v55 = vadd.f32 %v3772_v45, %v690_v48 }
 0x10f   :  { %v780_v50 = vpop.f32.mrf.mxu1  ;;  %v1748_v18 = vsub.f32 %v1746_v1, %v1747_v7  ;;  %v2201_v31 = vand.u32 4294901760, %v2200_v29 }
 0x110   :  { %v3783_v51 = vpop.f32.mrf.mxu0  ;;  %v781_v56 = vadd.f32 %v780_v50, %v680_v49 }
 0x111   :  { %v874_v62 = vadd.f32 %v3783_v51, %v787_v55  ;;  %v1749_v26 = vand.u32 4294901760, %v1748_v18 }
 0x112   :  { %v866_v58 = vpop.f32.mrf.mxu0 }
 0x113   :  { %v867_v63 = vadd.f32 %v866_v58, %v781_v56 }
 0x117   :  { %v3794_v54 = vpop.f32.mrf.mxu1 }
 0x118   :  { %v959_v2 = vadd.f32 %v3794_v54, %v874_v62 }
 0x119   :  { %v950_v60 = vpop.f32.mrf.mxu1 }
 0x11a   :  { %v3805_v61 = vpop.f32.mrf.mxu0  ;;  %v951_v3 = vadd.f32 %v950_v60, %v867_v63 }
 0x11b   :  { %v1048_v8 = vadd.f32 %v3805_v61, %v959_v2 }
 0x11c   :  { %v1041_v5 = vpop.f32.mrf.mxu0 }
 0x11d   :  { %v1042_v9 = vadd.f32 %v1041_v5, %v951_v3 }
 0x121   :  { %v3816_v6 = vpop.f32.mrf.mxu1 }
 0x122   :  { %v1129_v12 = vadd.f32 %v3816_v6, %v1048_v8 }
 0x123   :  { %v1122_v11 = vpop.f32.mrf.mxu1 }
 0x124   :  { %v1123_v14 = vadd.f32 %v1122_v11, %v1042_v9  ;;  %v2129_v22 = vsel %vm56_vm0, %v1129_v12, 0 }
 0x125   :  { %v2162_v21 = vand.u32 4294901760, %v2129_v22  ;;  %v3827_v35 = vpop.f32.mrf.mxu0 }
 0x126   :  { %v1677_v17 = vsel %vm56_vm0, %v1123_v14, 0  ;;  %v1231_v36 = vadd.f32 %v3827_v35, %v3528_v34 }
 0x127   :  { %v1710_v20 = vand.u32 4294901760, %v1677_v17  ;;  %v2239_v15 = vsub.f32 %v2129_v22, %v2162_v21  ;;  %v1220_v37 = vpop.f32.mrf.mxu0 }
 0x128   :  { %v1221_v39 = vadd.f32 %v3528_v34, %v1220_v37 }
 0x129   :  { %v1787_v23 = vsub.f32 %v1677_v17, %v1710_v20  ;;  %3884 = vmatpush3.xpose.msra.mxu0 %v1710_v20  ;;  %v2240_v30 = vand.u32 4294901760, %v2239_v15 }
 0x12a   :  { %3893 = vmatprep.subr.mxu0 %v4088_v19 }
 0x12b   :  { %v1788_v25 = vand.u32 4294901760, %v1787_v23  ;;  %v2241_v32 = vsub.f32 %v2239_v15, %v2240_v30 }
 0x12c   :  { %3886 = vmatmul.mubr.f32.vlgmr.msra.gmra.mxu0 %v1749_v26  ;;  %v3838_v38 = vpop.f32.mrf.mxu1 }
 0x12d   :  { %3894 = vmatpush3.xpose.msra.mxu0 %v1787_v23  ;;  %3895 = vmatprep.mubr.msk.f32.mxu0 %vm4089_vm1, %v4088_v19  ;;  %v1789_v27 = vsub.f32 %v1787_v23, %v1788_v25  ;;  %v2242_v33 = vand.u32 4294901760, %v2241_v32  ;;  %v1328_v40 = vadd.f32 %v3838_v38, %v1231_v36 }
 0x12e   :  { %3903 = vmatprep.subr.mxu0 %v4088_v19  ;;  %v1321_v41 = vpop.f32.mrf.mxu1 }
 0x12f   :  { %v1790_v28 = vand.u32 4294901760, %v1789_v27  ;;  %v1322_v43 = vadd.f32 %v1321_v41, %v1221_v39 }
 0x130   :  { %3896 = vmatmul.mubr.f32.vlgmr.msra.gmra.mxu0 %v1746_v1  ;;  %v3849_v42 = vpop.f32.mrf.mxu0 }
 0x131   :  { %3889 = vmatpush3.xpose.msra.mxu1 %v1790_v28  ;;  %3904 = vmatpush3.xpose.msra.mxu0 %v1788_v25  ;;  %v1415_v44 = vadd.f32 %v3849_v42, %v1328_v40 }
 0x132   :  { %3905 = vmatprep.mubr.msk.f32.mxu0 %vm4089_vm1, %v4088_v19  ;;  %3898 = vmatprep.subr.mxu1 %v4088_v19  ;;  %v1407_v45 = vpop.f32.mrf.mxu0 }
 0x133   :  { %3913 = vmatprep.subr.mxu0 %v4088_v19  ;;  %v1408_v47 = vadd.f32 %v1407_v45, %v1322_v43 }
 0x134   :  { %3891 = vmatmul.mubr.f32.vlgmr.msra.gmra.mxu1 %v4312_v59  ;;  %3906 = vmatmul.mubr.f32.vlgmr.msra.gmra.mxu0 %v4312_v59  ;;  %v3860_v46 = vpop.f32.mrf.mxu1 }
 0x135   :  { %3899 = vmatpush3.xpose.msra.mxu1 %v1710_v20  ;;  %3914 = vmatpush3.xpose.msra.mxu0 %v2162_v21  ;;  %v1500_v48 = vadd.f32 %v3860_v46, %v1415_v44 }
 0x136   :  { %3900 = vmatprep.mubr.msk.f32.mxu1 %vm4089_vm1, %v4088_v19  ;;  %3915 = vmatprep.mubr.msk.f32.mxu0 %vm4089_vm1, %v4088_v19  ;;  %v1491_v49 = vpop.f32.mrf.mxu1 }
 0x137   :  { %3908 = vmatprep.subr.mxu1 %v4088_v19  ;;  %3923 = vmatprep.subr.mxu0 %v4088_v19  ;;  %v1492_v50 = vadd.f32 %v1491_v49, %v1408_v47 }
 0x138   :  { %3901 = vmatmul.mubr.f32.vlgmr.msra.gmra.mxu1 %v1747_v7  ;;  %3916 = vmatmul.mubr.f32.vlgmr.msra.gmra.mxu0 %v2201_v31 }
 0x139   :  { %3909 = vmatpush3.xpose.msra.mxu1 %v1710_v20  ;;  %3924 = vmatpush3.xpose.msra.mxu0 %v2239_v15 }
 0x13a   :  { %3910 = vmatprep.mubr.msk.f32.mxu1 %vm4089_vm1, %v4088_v19  ;;  %3925 = vmatprep.mubr.msk.f32.mxu0 %vm4089_vm1, %v4088_v19  ;;  %v3871_v51 = vpop.f32.mrf.mxu0 }
 0x13b   :  { %3918 = vmatprep.subr.mxu1 %v4088_v19  ;;  %3933 = vmatprep.subr.mxu0 %v4088_v19  ;;  %v1589_v52 = vadd.f32 %v3871_v51, %v1500_v48 }
 0x13c   :  { %3911 = vmatmul.mubr.f32.vlgmr.msra.gmra.mxu1 %v4312_v59  ;;  %3926 = vmatmul.mubr.f32.vlgmr.msra.gmra.mxu0 %v2198_v24  ;;  %v1582_v53 = vpop.f32.mrf.mxu0 }
 0x13d   :  { %3919 = vmatpush3.xpose.msra.mxu1 %v2242_v33  ;;  %3934 = vmatpush3.xpose.msra.mxu0 %v2240_v30  ;;  %v1583_v54 = vadd.f32 %v1582_v53, %v1492_v50  ;;  %v3882_v55 = vpop.f32.mrf.mxu1 }
 0x13e   :  { %3920 = vmatprep.mubr.msk.f32.mxu1 %vm4089_vm1, %v4088_v19  ;;  %3935 = vmatprep.mubr.msk.f32.mxu0 %vm4089_vm1, %v4088_v19  ;;  %v4366_v56 = vadd.f32 %v3882_v55, %v1589_v52 }
 0x13f   :  { %3928 = vmatprep.subr.mxu1 %v4088_v19  ;;  %3943 = vmatprep.subr.mxu0 %v4088_v19  ;;  %v1663_v57 = vpop.f32.mrf.mxu1 }
 0x140   :  { %3921 = vmatmul.mubr.f32.vlgmr.msra.gmra.mxu1 %v4316_v16  ;;  %3936 = vmatmul.mubr.f32.vlgmr.msra.gmra.mxu0 %v4316_v16  ;;  %v1664_v58 = vadd.f32 %v1663_v57, %v1583_v54  ;;  %v3089_v51 = vand.u32 4294901760, %v4366_v56 }
 0x141   :  { %3929 = vmatpush3.xpose.msra.mxu1 %v2162_v21  ;;  %3930 = vmatprep.mubr.msk.f32.mxu1 %vm4089_vm1, %v4088_v19 }
 0x142   :  { %3938 = vmatprep.subr.mxu1 %v4088_v19  ;;  %3945 = vmatprep.mubr.msk.f32.mxu0 %vm4089_vm1, %v4088_v19  ;;  %v4368_v59 = vand.u32 4294901760, %v1664_v58  ;;  %v3166_v54 = vsub.f32 %v4366_v56, %v3089_v51 }
 0x144   :  { %3931 = vmatmul.mubr.f32.vlgmr.msra.gmra.mxu1 %v2199_v13  ;;  %v4371_v60 = vsub.f32 %v1664_v58, %v4368_v59  ;;  %3944 = vmatpush3.msra.mxu0 %v4368_v59 }
 0x145   :  { %3939 = vmatpush3.xpose.msra.mxu1 %v2162_v21  ;;  %3940 = vmatprep.mubr.msk.f32.mxu1 %vm4089_vm1, %v4088_v19 }
 0x146   :  { %3948 = vmatprep.subr.mxu1 %v4088_v19  ;;  %3953 = vmatprep.subr.mxu0 %v4088_v19  ;;  %v2718_v61 = vand.u32 4294901760, %v4371_v60 }
 0x148   :  { %3941 = vmatmul.mubr.f32.vlgmr.msra.gmra.mxu1 %v4316_v16  ;;  %v2719_v62 = vsub.f32 %v4371_v60, %v2718_v61 }
 0x149   :  { %3950 = vmatprep.mubr.msk.f32.mxu1 %vm4089_vm1, %v4088_v19 }
 0x14a   :  { %v2720_v63 = vand.u32 4294901760, %v2719_v62  ;;  %v3167_v62 = vand.u32 4294901760, %v3166_v54 }
 0x14c   :  { %3949 = vmatpush3.msra.mxu1 %v2720_v63 }
 0x14d   :  { %3958 = vmatprep.subr.mxu1 %v4088_v19 }
 0x1ec   :  { %v1751_v0 = vpop.f32.mrf.mxu0 }
 0x1ee   :  { %v3887_v1 = vpop.f32.mrf.mxu0 }
 0x1f0   :  { %v1901_v2 = vpop.f32.mrf.mxu0 }
 0x1f2   :  { %v3897_v3 = vpop.f32.mrf.mxu0 }
 0x1f3   :  { %v3168_v3 = vsub.f32 %v3166_v54, %v3167_v62 }
 0x1f4   :  { %v1827_v4 = vpop.f32.mrf.mxu1  ;;  %v2049_v5 = vpop.f32.mrf.mxu0 }
 0x1f5   :  { %v1828_v6 = vadd.f32 %v1827_v4, %v1751_v0 }
 0x1f6   :  { %v3892_v7 = vpop.f32.mrf.mxu1  ;;  %v3907_v8 = vpop.f32.mrf.mxu0 }
 0x1f7   :  { %v1902_v9 = vadd.f32 %v1901_v2, %v1828_v6  ;;  %v3169_v8 = vand.u32 4294901760, %v3168_v3 }
 0x1f8   :  { %v1975_v10 = vpop.f32.mrf.mxu1  ;;  %v2203_v11 = vpop.f32.mrf.mxu0 }
 0x1f9   :  { %v1976_v12 = vadd.f32 %v1975_v10, %v1902_v9 }
 0x1fa   :  { %v3902_v14 = vpop.f32.mrf.mxu1  ;;  %v3917_v16 = vpop.f32.mrf.mxu0 }
 0x1fb   :  { %v2050_v17 = vadd.f32 %v2049_v5, %v1976_v12 }
 0x1fc   :  { %v2121_v18 = vpop.f32.mrf.mxu1  ;;  %v2353_v20 = vpop.f32.mrf.mxu0 }
 0x1fd   :  { %v2122_v22 = vadd.f32 %v2121_v18, %v2050_v17 }
 0x1fe   :  { %v3912_v23 = vpop.f32.mrf.mxu1  ;;  %v3927_v24 = vpop.f32.mrf.mxu0 }
 0x1ff   :  { %v2578_v26 = vsel %vm2577_vm2, %v2122_v22, -inf }
 0x200   :  { %v2279_v21 = vpop.f32.mrf.mxu1  ;;  %2579 = vmax.xlane.f32.xlu0 %v2578_v26  ;;  %v2501_v25 = vpop.f32.mrf.mxu0 }
 0x201   :  { %v2280_v27 = vadd.f32 %v2279_v21, %v2203_v11 }
 0x202   :  { %v3922_v13 = vpop.f32.mrf.mxu1  ;;  %v3937_v15 = vpop.f32.mrf.mxu0 }
 0x203   :  { %v2354_v28 = vadd.f32 %v2353_v20, %v2280_v27 }
 0x204   :  { %v2427_v29 = vpop.f32.mrf.mxu1 }
 0x205   :  { %v2428_v30 = vadd.f32 %v2427_v29, %v2354_v28 }
 0x206   :  { %v3932_v31 = vpop.f32.mrf.mxu1 }
 0x207   :  { %v2502_v32 = vadd.f32 %v2501_v25, %v2428_v30 }
 0x208   :  { %v2573_v33 = vpop.f32.mrf.mxu1 }
 0x209   :  { %v2574_v34 = vadd.f32 %v2573_v33, %v2502_v32 }
 0x20a   :  { %v3942_v35 = vpop.f32.mrf.mxu1 }
 0x20b   :  { %v2581_v36 = vsel %vm2577_vm2, %v2574_v34, -inf }
 0x20c   :  { %2582 = vmax.xlane.f32.xlu0 %v2581_v36 }
 0x289   :  { %v2580_v37 = vpop.xlane.xlu0 %2579 }
 0x28a   :  { %v2584_v38 = vsub.f32 %v2122_v22, %v2580_v37 }
 0x28c   :  { %v2586_v39 = vmul.f32 1.442695, %v2584_v38 }
 0x28e   :  { %4010 = vpow2.f32 %v2586_v39 }
 0x295   :  { %v2583_v40 = vpop.xlane.xlu0 %2582 }
 0x296   :  { %v2585_v41 = vsub.f32 %v2574_v34, %v2583_v40 }
 0x298   :  { %v2588_v42 = vmul.f32 1.442695, %v2585_v41 }
 0x29a   :  { %4012 = vpow2.f32 %v2588_v42 }
 0x29b   :  { %v4011_v43 = vpop.eup %4010 }
 0x29c   :  { %v2590_v44 = vsel %vm2577_vm2, %v4011_v43, 0.0 }
 0x29d   :  { %2591 = vadd.xlane.f32.xlu1 %v2590_v44 }
 0x2a7   :  { %v4013_v45 = vpop.eup %4012 }
 0x2a8   :  { %v2593_v46 = vsel %vm2577_vm2, %v4013_v45, 0.0 }
 0x2a9   :  { %2594 = vadd.xlane.f32.xlu1 %v2593_v46 }
 0x326   :  { %v2592_v47 = vpop.xlane.xlu1 %2591 }
 0x327   :  { %4014 = vrcp.f32 %v2592_v47 }
 0x332   :  { %v2595_v48 = vpop.xlane.xlu1 %2594 }
 0x333   :  { %4016 = vrcp.f32 %v2595_v48 }
 0x334   :  { %v4015_v49 = vpop.eup %4014 }
 0x335   :  { %v2598_v50 = vmul.f32 %v4015_v49, %v2592_v47 }
 0x337   :  { %v2600_v52 = vsub.f32 2.0, %v2598_v50 }
 0x339   :  { %v2602_v53 = vmul.f32 %v4015_v49, %v2600_v52 }
 0x33b   :  { %v2604_v55 = vmul.f32 %v4011_v43, %v2602_v53 }
 0x33d   :  { %v2607_v57 = vsel %vm2577_vm2, %v2604_v55, 0 }
 0x33e   :  { %v2675_v58 = vand.u32 4294901760, %v2607_v57 }
 0x340   :  { %v4017_v63 = vpop.eup %4016  ;;  %3951 = vmatmul.mubr.f32.vlgmr.msra.gmra.mxu1 %v2675_v58  ;;  %v2676_v0 = vsub.f32 %v2607_v57, %v2675_v58 }
 0x341   :  { %v2599_v1 = vmul.f32 %v4017_v63, %v2595_v48  ;;  %3959 = vmatpush3.msra.mxu1 %v4368_v59  ;;  %3960 = vmatprep.mubr.msk.f32.mxu1 %vm4089_vm1, %v4088_v19 }
 0x342   :  { %3968 = vmatprep.subr.mxu1 %v4088_v19  ;;  %v2677_v2 = vand.u32 4294901760, %v2676_v0 }
 0x343   :  { %v2601_v4 = vsub.f32 2.0, %v2599_v1 }
 0x344   :  { %3961 = vmatmul.mubr.f32.vlgmr.msra.gmra.mxu1 %v2677_v2  ;;  %v2678_v56 = vsub.f32 %v2676_v0, %v2677_v2 }
 0x345   :  { %v2603_v5 = vmul.f32 %v4017_v63, %v2601_v4  ;;  %3969 = vmatpush3.msra.mxu1 %v4368_v59  ;;  %3970 = vmatprep.mubr.msk.f32.mxu1 %vm4089_vm1, %v4088_v19 }
 0x346   :  { %3978 = vmatprep.subr.mxu1 %v4088_v19  ;;  %v2679_v6 = vand.u32 4294901760, %v2678_v56 }
 0x347   :  { %v2605_v7 = vmul.f32 %v4013_v45, %v2603_v5 }
 0x348   :  { %3946 = vmatmul.mubr.f32.vlgmr.msra.gmra.mxu0 %v2679_v6  ;;  %3971 = vmatmul.mubr.f32.vlgmr.msra.gmra.mxu1 %v2675_v58 }
 0x349   :  { %v3056_v9 = vsel %vm2577_vm2, %v2605_v7, 0  ;;  %3954 = vmatpush3.msra.mxu0 %v4371_v60  ;;  %3979 = vmatpush3.msra.mxu1 %v3169_v8 }
 0x34a   :  { %3955 = vmatprep.mubr.msk.f32.mxu0 %vm4089_vm1, %v4088_v19  ;;  %3963 = vmatprep.subr.mxu0 %v4088_v19  ;;  %v3124_v59 = vand.u32 4294901760, %v3056_v9 }
 0x34b   :  { %3980 = vmatprep.mubr.msk.f32.mxu1 %vm4089_vm1, %v4088_v19  ;;  %3988 = vmatprep.subr.mxu1 %v4088_v19 }
 0x34c   :  { %3956 = vmatmul.mubr.f32.vlgmr.msra.gmra.mxu0 %v2676_v0  ;;  %3981 = vmatmul.mubr.f32.vlgmr.msra.gmra.mxu1 %v3124_v59  ;;  %v3125_v10 = vsub.f32 %v3056_v9, %v3124_v59 }
 0x34d   :  { %3964 = vmatpush3.msra.mxu0 %v2718_v61  ;;  %3989 = vmatpush3.msra.mxu1 %v3089_v51 }
 0x34e   :  { %3965 = vmatprep.mubr.msk.f32.mxu0 %vm4089_vm1, %v4088_v19  ;;  %3973 = vmatprep.subr.mxu0 %v4088_v19  ;;  %v3126_v11 = vand.u32 4294901760, %v3125_v10 }
 0x34f   :  { %3990 = vmatprep.mubr.msk.f32.mxu1 %vm4089_vm1, %v4088_v19  ;;  %3998 = vmatprep.subr.mxu1 %v4088_v19 }
 0x350   :  { %3966 = vmatmul.mubr.f32.vlgmr.msra.gmra.mxu0 %v2675_v58  ;;  %3991 = vmatmul.mubr.f32.vlgmr.msra.gmra.mxu1 %v3126_v11  ;;  %v3127_v12 = vsub.f32 %v3125_v10, %v3126_v11 }
 0x351   :  { %3974 = vmatpush3.msra.mxu0 %v3089_v51  ;;  %3999 = vmatpush3.msra.mxu1 %v3089_v51 }
 0x352   :  { %3975 = vmatprep.mubr.msk.f32.mxu0 %vm4089_vm1, %v4088_v19  ;;  %3983 = vmatprep.subr.mxu0 %v4088_v19  ;;  %v3128_v60 = vand.u32 4294901760, %v3127_v12 }
 0x353   :  { %4000 = vmatprep.mubr.msk.f32.mxu1 %vm4089_vm1, %v4088_v19 }
 0x354   :  { %3976 = vmatmul.mubr.f32.vlgmr.msra.gmra.mxu0 %v3128_v60  ;;  %4001 = vmatmul.mubr.f32.vlgmr.msra.gmra.mxu1 %v3124_v59 }
 0x355   :  { %3984 = vmatpush3.msra.mxu0 %v3166_v54  ;;  %3985 = vmatprep.mubr.msk.f32.mxu0 %vm4089_vm1, %v4088_v19 }
 0x356   :  { %3993 = vmatprep.subr.mxu0 %v4088_v19 }
 0x358   :  { %3986 = vmatmul.mubr.f32.vlgmr.msra.gmra.mxu0 %v3125_v10 }
 0x359   :  { %3994 = vmatpush3.msra.mxu0 %v3167_v62  ;;  %3995 = vmatprep.mubr.msk.f32.mxu0 %vm4089_vm1, %v4088_v19 }
 0x35c   :  { %3996 = vmatmul.mubr.f32.vlgmr.msra.gmra.mxu0 %v3124_v59 }
 0x400   :  { %v2757_v61 = vpop.f32.mrf.mxu1 }
 0x402   :  { %v3952_v14 = vpop.f32.mrf.mxu1 }
 0x404   :  { %v2905_v16 = vpop.f32.mrf.mxu1 }
 0x406   :  { %v3962_v17 = vpop.f32.mrf.mxu1 }
 0x408   :  { %v2681_v18 = vpop.f32.mrf.mxu0  ;;  %v3051_v20 = vpop.f32.mrf.mxu1 }
 0x409   :  { %v2758_v24 = vadd.f32 %v2757_v61, %v2681_v18 }
 0x40a   :  { %v3947_v22 = vpop.f32.mrf.mxu0  ;;  %v3972_v23 = vpop.f32.mrf.mxu1 }
 0x40c   :  { %v2831_v26 = vpop.f32.mrf.mxu0  ;;  %v3206_v21 = vpop.f32.mrf.mxu1 }
 0x40d   :  { %v2832_v25 = vadd.f32 %v2831_v26, %v2758_v24 }
 0x40e   :  { %v3957_v27 = vpop.f32.mrf.mxu0  ;;  %v3982_v13 = vpop.f32.mrf.mxu1 }
 0x40f   :  { %v2906_v15 = vadd.f32 %v2905_v16, %v2832_v25 }
 0x410   :  { %v2979_v28 = vpop.f32.mrf.mxu0  ;;  %v3354_v29 = vpop.f32.mrf.mxu1 }
 0x411   :  { %v2980_v30 = vadd.f32 %v2979_v28, %v2906_v15 }
 0x412   :  { %v3967_v19 = vpop.f32.mrf.mxu0  ;;  %v3992_v31 = vpop.f32.mrf.mxu1 }
 0x413   :  { %v3052_v32 = vadd.f32 %v3051_v20, %v2980_v30 }
 0x414   :  { %v3130_v33 = vpop.f32.mrf.mxu0  ;;  %v3500_v34 = vpop.f32.mrf.mxu1 }
 0x415   :  { %3504 = vst.msk [vmem:[#allocation7] sm:$0xff] %vm56_vm0, %v3052_v32  ;;  %v3207_v37 = vadd.f32 %v3206_v21, %v3130_v33 }
 0x416   :  { %v3977_v35 = vpop.f32.mrf.mxu0  ;;  %v4002_v36 = vpop.f32.mrf.mxu1 }
 0x418   :  { %v3280_v38 = vpop.f32.mrf.mxu0 }
 0x419   :  { %v3281_v39 = vadd.f32 %v3280_v38, %v3207_v37 }
 0x41a   :  { %v3987_v40 = vpop.f32.mrf.mxu0 }
 0x41b   :  { %v3355_v41 = vadd.f32 %v3354_v29, %v3281_v39 }
 0x41c   :  { %v3428_v42 = vpop.f32.mrf.mxu0 }
 0x41d   :  { %v3429_v43 = vadd.f32 %v3428_v42, %v3355_v41 }
 0x41e   :  { %v3997_v44 = vpop.f32.mrf.mxu0 }
 0x41f   :  { %v3501_v45 = vadd.f32 %v3500_v34, %v3429_v43 }
 0x421   :  { %3505 = vst.msk [vmem:[#allocation7 + $0x8] sm:$0xff] %vm56_vm0, %v3501_v45 }
 0x422   :  { %4069 = shalt.err (!%p4066_p0)
}
 0x423   :  { %3517 = dma.vmem_to_hbm [thread:$0]  %s3512_s28, 256, %s4432_s3, [#allocation4], %s4085_s15, %s4085_s15, %s4086_s16  }
 0x424   :  { %4082 = dma.done.wait [#allocation4], 256  }
 0x425   :  { %4083 = vsyncadd [#allocation4], 4294967040 }
 0x426   :  { %3521 = vsyncpa [#allocation3], 1 }
 0x427   :  { %3522 = vsyncpa [#allocation6], 1 }
 0x428   :  { %3523 = vsyncpa [#allocation4], 1 }

</bundles_post_ra>
